<compile_context>
chip_gen: v5e
topology: v5e:2x2
jax: 0.10.0
libtpu: 0.0.40
codegen_flags: <defaults>
</compile_context>

<pallas_src>
import jax
import jax.numpy as jnp
from jax.experimental import pallas as pl
from jax.experimental.pallas import tpu as pltpu


def _h_sigmoid_kernel(x_ref, o_ref):
    x = x_ref[...]
    # ReLU6(x + 3) / 6  ==  clamp(x + 3, 0, 6) * (1/6)
    o_ref[...] = (jnp.clip(x + 3.0, 0.0, 6.0) * (1.0 / 6.0)).astype(o_ref.dtype)


_LANE = 1024                            # lane-dense slab width (multiple of 128)
_TARGET_TILE_BYTES = 4 * 1024 * 1024    # ~4 MiB per tile buffer
_VMEM_LIMIT_BYTES = 48 * 1024 * 1024    # >> working set; under v7x 64 MiB physical


def h_sigmoid(x: jax.Array) -> jax.Array:
    """Applies h_sigmoid elementwise. Accepts any shape (e.g. NCHW)."""
    orig_shape = x.shape
    dtype = x.dtype
    total = x.size
    if total == 0:
        return x

    flat = x.reshape(-1)

    # Flatten to a lane-dense (rows, _LANE) slab; pad the tail so the last
    # row is full.  Padded elements are sliced off below (h_sigmoid(0)=0.5,
    # so padding must never leak into the returned array).
    L = _LANE
    rows = -(-total // L)
    padded_total = rows * L
    if padded_total != total:
        flat = jnp.pad(flat, (0, padded_total - total))
    x2d = flat.reshape(rows, L)

    # Row tile: ~_TARGET_TILE_BYTES per block.  Working set with default
    # double buffering is ~4x that, well under _VMEM_LIMIT_BYTES on every
    # generation (including v7x's 64 MiB physical VMEM), and large inputs
    # give many grid steps for the v7x two-TensorCore 'parallel' sharding.
    bytes_per_row = L * jnp.dtype(dtype).itemsize
    tile_r = max(1, _TARGET_TILE_BYTES // bytes_per_row)
    tile_r = min(tile_r, rows)
    if tile_r < rows:
        # Keep sublane alignment when actually tiling the row axis.
        tile_r = max(8, (tile_r // 8) * 8)

    grid = (pl.cdiv(rows, tile_r),)

    out2d = pl.pallas_call(
        _h_sigmoid_kernel,
        out_shape=jax.ShapeDtypeStruct((rows, L), dtype),
        grid=grid,
        in_specs=[pl.BlockSpec((tile_r, L), lambda i: (i, 0))],
        out_specs=pl.BlockSpec((tile_r, L), lambda i: (i, 0)),
        compiler_params=pltpu.CompilerParams(
            dimension_semantics=("parallel",),
            vmem_limit_bytes=_VMEM_LIMIT_BYTES,
        ),
    )(x2d)

    out_flat = out2d.reshape(-1)[:total]
    return out_flat.reshape(orig_shape)


if __name__ == "__main__":
    key = jax.random.PRNGKey(0)

    # NCHW input, small shape consistent with the module's usage.
    x = jax.random.normal(key, (2, 4, 16, 16), dtype=jnp.float32) * 4.0
    out = jax.block_until_ready(h_sigmoid(x))
    ref = jnp.clip(x + 3.0, 0.0, 6.0) / 6.0
    assert out.shape == x.shape
    assert out.dtype == x.dtype
    assert jnp.allclose(out, ref, atol=1e-6), "mismatch vs reference"

    # Secondary check: a size that is NOT a multiple of the lane width,
    # exercising the pad-and-slice path (padding must not leak into output).
    x2 = jax.random.normal(jax.random.PRNGKey(0), (3, 5, 7, 11), dtype=jnp.float32) * 4.0
    out2 = jax.block_until_ready(h_sigmoid(x2))
    ref2 = jnp.clip(x2 + 3.0, 0.0, 6.0) / 6.0
    assert out2.shape == x2.shape
    assert jnp.allclose(out2, ref2, atol=1e-6), "mismatch vs reference (padded path)"

    print("KERNEL_OK")
</pallas_src>

<mosaic_0001>
module attributes {stable_mosaic.version = 11 : i64} {
  func.func @_h_sigmoid_kernel(%arg0: i32, %arg1: memref<2x1024xf32, #tpu.memory_space<vmem>>, %arg2: memref<2x1024xf32, #tpu.memory_space<vmem>>) attributes {dimension_semantics = [#tpu.dimension_semantics<parallel>], iteration_bounds = array<i64: 1>, scalar_prefetch = 0 : i64, scratch_operands = 0 : i64, tpu.core_type = #tpu.core_type<tc>, window_params = [{transform_indices = @transform_0, window_bounds = array<i64: 2, 1024>}, {transform_indices = @transform_1, window_bounds = array<i64: 2, 1024>}]} {
    %c0 = arith.constant 0 : index
    %c0_0 = arith.constant 0 : index
    %0 = vector.load %arg1[%c0, %c0_0] : memref<2x1024xf32, #tpu.memory_space<vmem>>, vector<2x1024xf32>
    %cst = arith.constant 3.000000e+00 : f32
    %1 = vector.broadcast %cst : f32 to vector<2x1024xf32>
    %2 = arith.addf %0, %1 : vector<2x1024xf32>
    %cst_1 = arith.constant 0.000000e+00 : f32
    %cst_2 = arith.constant 6.000000e+00 : f32
    %3 = vector.broadcast %cst_1 : f32 to vector<2x1024xf32>
    %4 = arith.maximumf %3, %2 : vector<2x1024xf32>
    %5 = vector.broadcast %cst_2 : f32 to vector<2x1024xf32>
    %6 = arith.minimumf %5, %4 : vector<2x1024xf32>
    %cst_3 = arith.constant 0.166666672 : f32
    %7 = vector.broadcast %cst_3 : f32 to vector<2x1024xf32>
    %8 = arith.mulf %6, %7 : vector<2x1024xf32>
    %c0_4 = arith.constant 0 : index
    %c0_5 = arith.constant 0 : index
    %9 = vector.load %arg2[%c0_4, %c0_5] : memref<2x1024xf32, #tpu.memory_space<vmem>>, vector<2x1024xf32>
    tpu.vector_store %arg2[%c0_4, %c0_5], %8 {strides = array<i32>} : memref<2x1024xf32, #tpu.memory_space<vmem>>, vector<2x1024xf32>,
    return
  }
  func.func @transform_0(%arg0: i32) -> (i32, i32) {
    %c0_i32 = arith.constant 0 : i32
    %c0_i32_0 = arith.constant 0 : i32
    return %arg0, %c0_i32 : i32, i32
  }
  func.func @transform_1(%arg0: i32) -> (i32, i32) {
    %c0_i32 = arith.constant 0 : i32
    %c0_i32_0 = arith.constant 0 : i32
    return %arg0, %c0_i32 : i32, i32
  }
}

</mosaic_0001>

<bundles_post_ra>
// kernel: tpu_custom_call.1
= control target key start
LH: loop header
LB: loop body
LE: loop exit
PB: predicated region body
PF: predicated region fallthrough
CT: control target
= control target key end

     0   :  { %6 = vsyncpa [#allocation3], 0  ;;  %s124_s0 = inlined_call_operand.hbm [shape: f32[2,1024], index: 0, kind: input, shape index: {}]   ;;  %s125_s1 = inlined_call_operand.hbm [shape: f32[2,1024], index: 1, kind: output, shape index: {}]  }
   0x1   :  { %7 = vsyncpa [#allocation4], 0  ;;  %s13_s8 = sshll.u32 %s124_s0, 4  ;;  %s106_s9 = smov [#allocation2]   ;;  %s14_s8 = int_to_ptr.hbm [resolvable:$true] %s13_s8 }
   0x2   :  { %s15_s10 = sshll.u32 %s106_s9, 4  ;;  %s16_s10 = int_to_ptr.vmem [resolvable:$true] %s15_s10 }
   0x3   :  { %18 = dma.hbm_to_vmem [thread:$0]  %s14_s8, 256, %s16_s10, [#allocation3]  }
   0x4   :  { %102 = dma.done.wait [#allocation3], 256  }
   0x5   :  { %103 = vsyncadd [#allocation3], 4294967040  ;;  %v23_v0 = vld [vmem:[#allocation2] sm:$0xff]  ;;  %v24_v1 = vld [vmem:[#allocation2 + $0x8] sm:$0xff]  ;;  %s107_s11 = smov [#allocation5]   ;;  %s42_s0 = sshll.u32 %s125_s1, 4  ;;  %s43_s0 = int_to_ptr.hbm [resolvable:$true] %s42_s0 }
   0x6   :  { %v25_v2 = vadd.f32 3.0, %v23_v0  ;;  %v26_v3 = vadd.f32 3.0, %v24_v1  ;;  %s40_s12 = sshll.u32 %s107_s11, 4  ;;  %s41_s12 = int_to_ptr.vmem [resolvable:$true] %s40_s12 }
   0x8   :  { %v27_v4 = vmax.f32 %v25_v2, 0.0  ;;  %v28_v5 = vmax.f32 %v26_v3, 0.0 }
   0xa   :  { %v29_v6 = vmin.f32 %v27_v4, 6.0  ;;  %v30_v7 = vmin.f32 %v28_v5, 6.0 }
   0xc   :  { %v31_v8 = vmul.f32 0.16666667, %v29_v6  ;;  %v32_v9 = vmul.f32 0.16666667, %v30_v7 }
   0xe   :  { %33 = vst [vmem:[#allocation5] sm:$0xff] %v31_v8 }
   0xf   :  { %34 = vst [vmem:[#allocation5 + $0x8] sm:$0xff] %v32_v9 }
  0x10   :  { %45 = dma.vmem_to_hbm [thread:$0]  %s41_s12, 256, %s43_s0, [#allocation4]  }
  0x11   :  { %104 = dma.done.wait [#allocation4], 256  }
  0x12   :  { %105 = vsyncadd [#allocation4], 4294967040 }
  0x13   :  { %50 = vsyncpa [#allocation3], 1 }
  0x14   :  { %51 = vsyncpa [#allocation4], 1 }

</bundles_post_ra>
